<compile_context>
chip_gen: v6e
topology: v6e:2x2x1
jax: 0.10.0
libtpu: 0.0.40
codegen_flags: <defaults>
</compile_context>

<pallas_src>
import jax
import jax.numpy as jnp
import numpy as np
from jax import lax
from jax.experimental import pallas as pl
from jax.experimental.pallas import tpu as pltpu


# ---------------------------------------------------------------------------
# Fused kernel: hoisted input projection, reverse-direction LSTM recurrence
# (fully unrolled, carries in vregs), PReLU/BN/FC/BN/sigmoid head epilogue.
# ---------------------------------------------------------------------------
def _ablstm_kernel(alpha_ref,          # SMEM (1, 1)     PReLU alpha
                   x_ref,              # VMEM (T*B, E)   time-REVERSED input, f32
                   wih_ref,            # VMEM (E, 4H)    W_ih^T, f32
                   whh_ref,            # VMEM (H, 4H)    W_hh^T, bf16
                   b_ref,              # VMEM (1, 4H)    b_ih + b_hh, f32
                   bn1_ref,            # VMEM (2, H)     [gamma1 ; beta1]
                   wfc_ref,            # VMEM (H, NOUT)  W_fc^T
                   bn2_ref,            # VMEM (3, NOUT)  [b_fc ; gamma2 ; beta2]
                   out_ref):           # VMEM (B, NOUT)
    TB, E = x_ref.shape
    H = whh_ref.shape[0]
    B = out_ref.shape[0]
    T = TB // B
    eps = 1e-5

    # --- one-shot input projection (single well-shaped MXU matmul, bias
    #     folded in once; off the serial per-step path so it stays f32) ------
    xproj = (jnp.dot(x_ref[...], wih_ref[...],
                     preferred_element_type=jnp.float32)
             + b_ref[...])                                   # (T*B, 4H)

    # Recurrent weight hoisted once: the constant RHS stays resident across
    # the unrolled steps instead of being re-streamed each iteration.
    w_hh = whh_ref[...]                                      # (H, 4H) bf16

    # sigmoid(x) = 0.5*tanh(x/2) + 0.5  ->  pre-scale the i,f,o gate columns
    # by 0.5 so a single full-vreg tanh covers all four gates (gate order is
    # i, f, g, o as in torch.nn.LSTM).
    half = jnp.full((1, H), 0.5, jnp.float32)
    one = jnp.full((1, H), 1.0, jnp.float32)
    gate_scale = jnp.concatenate([half, half, one, half], axis=1)   # (1, 4H)

    h = jnp.zeros((B, H), jnp.float32)
    c = jnp.zeros((B, H), jnp.float32)
    # T is small and static here -> fully unrolled recurrence, carries stay in
    # vregs, all slices static.  (For realistic T: lax.fori_loop with a bounded
    # unroll and xproj staged in a VMEM scratch indexed via pl.ds.)
    for t in range(T):
        xp_t = xproj[t * B:(t + 1) * B, :]                   # (B, 4H) static slice
        gates = xp_t + jnp.dot(h.astype(jnp.bfloat16), w_hh,
                               preferred_element_type=jnp.float32)
        th = jnp.tanh(gates * gate_scale)                    # 1 EUP pass, (B, 4H)
        sg = 0.5 * th + 0.5                                  # sigmoids of i, f, o
        i_g = sg[:, 0 * H:1 * H]
        f_g = sg[:, 1 * H:2 * H]
        g_g = th[:, 2 * H:3 * H]
        o_g = sg[:, 3 * H:4 * H]
        c = f_g * c + i_g * g_g
        h = o_g * jnp.tanh(c)                                # 2nd EUP pass, (B, H)

    # ---- head epilogue on the final backward-direction hidden state --------
    a = alpha_ref[0, 0]                                      # scalar PReLU slope
    z = jnp.maximum(h, 0.0) + a * jnp.minimum(h, 0.0)

    # BatchNorm1d(hidden_dim), training mode (biased batch stats)
    mu1 = jnp.mean(z, axis=0, keepdims=True)
    var1 = jnp.mean((z - mu1) ** 2, axis=0, keepdims=True)
    z = (z - mu1) * lax.rsqrt(var1 + eps) * bn1_ref[0:1, :] + bn1_ref[1:2, :]

    # Linear(hidden_dim, n_output)
    z = jnp.dot(z, wfc_ref[...],
                preferred_element_type=jnp.float32) + bn2_ref[0:1, :]

    # BatchNorm1d(n_output), training mode
    mu2 = jnp.mean(z, axis=0, keepdims=True)
    var2 = jnp.mean((z - mu2) ** 2, axis=0, keepdims=True)
    z = (z - mu2) * lax.rsqrt(var2 + eps) * bn2_ref[1:2, :] + bn2_ref[2:3, :]

    out_ref[...] = jax.nn.sigmoid(z)


def ablstm_forward_pallas(x, params):
    """x: (T, B, E) seq-major float input. Returns (B, n_output) sigmoid output."""
    T, B, E = x.shape
    H = params["w_hh"].shape[1]
    NOUT = params["w_fc"].shape[0]

    # Backward direction of the biLSTM == forward recurrence on reversed time.
    x_rev = jnp.flip(x.astype(jnp.float32), axis=0).reshape(T * B, E)
    wih_t = jnp.transpose(params["w_ih"]).astype(jnp.float32)          # (E, 4H)
    whh_t = jnp.transpose(params["w_hh"]).astype(jnp.bfloat16)         # (H, 4H) bf16 MXU operand
    bias = params["b_lstm"].reshape(1, 4 * H).astype(jnp.float32)      # (1, 4H)
    alpha = jnp.asarray(params["prelu_a"], jnp.float32).reshape(1, 1)
    bn1 = jnp.stack([params["bn1_g"], params["bn1_b"]], axis=0
                    ).astype(jnp.float32)                              # (2, H)
    wfc_t = jnp.transpose(params["w_fc"]).astype(jnp.float32)          # (H, NOUT)
    bn2 = jnp.stack([params["b_fc"], params["bn2_g"], params["bn2_b"]], axis=0
                    ).astype(jnp.float32)                              # (3, NOUT)

    return pl.pallas_call(
        _ablstm_kernel,
        out_shape=jax.ShapeDtypeStruct((B, NOUT), jnp.float32),
        in_specs=[
            pl.BlockSpec(memory_space=pltpu.MemorySpace.SMEM),   # alpha (scalar)
            pl.BlockSpec(memory_space=pltpu.MemorySpace.VMEM),   # x_rev (T*B, E)
            pl.BlockSpec(memory_space=pltpu.MemorySpace.VMEM),   # W_ih^T
            pl.BlockSpec(memory_space=pltpu.MemorySpace.VMEM),   # W_hh^T (bf16)
            pl.BlockSpec(memory_space=pltpu.MemorySpace.VMEM),   # bias
            pl.BlockSpec(memory_space=pltpu.MemorySpace.VMEM),   # bn1 pack
            pl.BlockSpec(memory_space=pltpu.MemorySpace.VMEM),   # W_fc^T
            pl.BlockSpec(memory_space=pltpu.MemorySpace.VMEM),   # bn2/b_fc pack
        ],
        out_specs=pl.BlockSpec(memory_space=pltpu.MemorySpace.VMEM),
    )(alpha, x_rev, wih_t, whh_t, bias, bn1, wfc_t, bn2)


# ---------------------------------------------------------------------------
# Pure-JAX reference (matches the PyTorch forward, float32, HIGHEST precision).
# ---------------------------------------------------------------------------
def ablstm_forward_ref(x, params):
    T, B, E = x.shape
    H = params["w_hh"].shape[1]
    hi = jnp.zeros((B, H), jnp.float32)
    ci = jnp.zeros((B, H), jnp.float32)
    P = lax.Precision.HIGHEST
    for t in range(T - 1, -1, -1):
        gates = (jnp.dot(x[t], params["w_ih"].T, precision=P)
                 + jnp.dot(hi, params["w_hh"].T, precision=P)
                 + params["b_lstm"][None, :])
        i_g = jax.nn.sigmoid(gates[:, 0 * H:1 * H])
        f_g = jax.nn.sigmoid(gates[:, 1 * H:2 * H])
        g_g = jnp.tanh(gates[:, 2 * H:3 * H])
        o_g = jax.nn.sigmoid(gates[:, 3 * H:4 * H])
        ci = f_g * ci + i_g * g_g
        hi = o_g * jnp.tanh(ci)

    eps = 1e-5
    a = params["prelu_a"]
    z = jnp.maximum(hi, 0.0) + a * jnp.minimum(hi, 0.0)
    mu1 = jnp.mean(z, axis=0, keepdims=True)
    v1 = jnp.mean((z - mu1) ** 2, axis=0, keepdims=True)
    z = (z - mu1) / jnp.sqrt(v1 + eps) * params["bn1_g"][None, :] + params["bn1_b"][None, :]
    z = jnp.dot(z, params["w_fc"].T, precision=P) + params["b_fc"][None, :]
    mu2 = jnp.mean(z, axis=0, keepdims=True)
    v2 = jnp.mean((z - mu2) ** 2, axis=0, keepdims=True)
    z = (z - mu2) / jnp.sqrt(v2 + eps) * params["bn2_g"][None, :] + params["bn2_b"][None, :]
    return jax.nn.sigmoid(z)


def make_params(key, E, H, NOUT):
    ks = jax.random.split(key, 4)
    # LSTM init_weight(): kaiming_uniform_ on weights, zeros on biases.
    b_ih = (6.0 / E) ** 0.5
    b_hh = (6.0 / H) ** 0.5
    w_ih = jax.random.uniform(ks[0], (4 * H, E), jnp.float32, -b_ih, b_ih)
    w_hh = jax.random.uniform(ks[1], (4 * H, H), jnp.float32, -b_hh, b_hh)
    b_lstm = jnp.zeros((4 * H,), jnp.float32)                 # b_ih + b_hh = 0
    # Linear default init.
    b_fc_bound = 1.0 / (H ** 0.5)
    w_fc = jax.random.uniform(ks[2], (NOUT, H), jnp.float32, -b_fc_bound, b_fc_bound)
    b_fc = jax.random.uniform(ks[3], (NOUT,), jnp.float32, -b_fc_bound, b_fc_bound)
    return dict(
        w_ih=w_ih, w_hh=w_hh, b_lstm=b_lstm,
        prelu_a=jnp.float32(0.25),
        bn1_g=jnp.ones((H,), jnp.float32), bn1_b=jnp.zeros((H,), jnp.float32),
        w_fc=w_fc, b_fc=b_fc,
        bn2_g=jnp.ones((NOUT,), jnp.float32), bn2_b=jnp.zeros((NOUT,), jnp.float32),
    )


if __name__ == "__main__":
    T, B, E, H, NOUT = 8, 4, 16, 32, 8
    key = jax.random.PRNGKey(0)
    kx, kp = jax.random.split(key)
    x = jax.random.normal(kx, (T, B, E), jnp.float32)         # seq-major (T, B, E)
    params = make_params(kp, E, H, NOUT)

    out = ablstm_forward_pallas(x, params)
    out = jax.block_until_ready(out)

    ref = jax.block_until_ready(ablstm_forward_ref(x, params))
    # Tolerance budget: recurrent matmul uses bf16 MXU operands (f32 accumulate)
    # vs an f32 HIGHEST-precision reference (module nominally runs in f64); the
    # bf16 operand rounding is amplified by the small-batch (B=4) BatchNorm
    # statistics, so 2e-2 on the (0,1) sigmoid outputs is the documented budget.
    np.testing.assert_allclose(np.asarray(out), np.asarray(ref),
                               rtol=2e-2, atol=2e-2)

    assert out.shape == (B, NOUT)
    print("KERNEL_OK")
</pallas_src>

<mosaic_0001>
module attributes {stable_mosaic.version = 11 : i64} {
  func.func @_ablstm_kernel(%arg0: memref<1x1xf32, #tpu.memory_space<smem>>, %arg1: memref<32x16xf32, #tpu.memory_space<vmem>>, %arg2: memref<16x128xf32, #tpu.memory_space<vmem>>, %arg3: memref<32x128xbf16, #tpu.memory_space<vmem>>, %arg4: memref<1x128xf32, #tpu.memory_space<vmem>>, %arg5: memref<2x32xf32, #tpu.memory_space<vmem>>, %arg6: memref<32x8xf32, #tpu.memory_space<vmem>>, %arg7: memref<3x8xf32, #tpu.memory_space<vmem>>, %arg8: memref<4x8xf32, #tpu.memory_space<vmem>>) attributes {dimension_semantics = [], scalar_prefetch = 0 : i64, scratch_operands = 0 : i64, tpu.core_type = #tpu.core_type<tc>} {
    %c0 = arith.constant 0 : index
    %c0_0 = arith.constant 0 : index
    %0 = vector.load %arg1[%c0, %c0_0] : memref<32x16xf32, #tpu.memory_space<vmem>>, vector<32x16xf32>
    %c0_1 = arith.constant 0 : index
    %c0_2 = arith.constant 0 : index
    %1 = vector.load %arg2[%c0_1, %c0_2] : memref<16x128xf32, #tpu.memory_space<vmem>>, vector<16x128xf32>
    %cst = arith.constant dense<0.000000e+00> : vector<32x128xf32>
    %2 = tpu.matmul %0, %1, %cst {dimension_numbers = #tpu.dot_dimension_numbers<[1], [0], [0], [1], [0, 0, 1, 1], [], []>} : vector<32x16xf32>, vector<16x128xf32>, vector<32x128xf32> -> vector<32x128xf32>
    %c0_3 = arith.constant 0 : index
    %c0_4 = arith.constant 0 : index
    %3 = vector.load %arg4[%c0_3, %c0_4] : memref<1x128xf32, #tpu.memory_space<vmem>>, vector<1x128xf32>
    %4 = vector.broadcast %3 : vector<1x128xf32> to vector<32x128xf32>
    %5 = arith.addf %2, %4 : vector<32x128xf32>
    %c0_5 = arith.constant 0 : index
    %c0_6 = arith.constant 0 : index
    %6 = vector.load %arg3[%c0_5, %c0_6] : memref<32x128xbf16, #tpu.memory_space<vmem>>, vector<32x128xbf16>
    %cst_7 = arith.constant 5.000000e-01 : f32
    %7 = vector.broadcast %cst_7 : f32 to vector<1x32xf32>
    %cst_8 = arith.constant 1.000000e+00 : f32
    %8 = vector.broadcast %cst_8 : f32 to vector<1x32xf32>
    %9 = tpu.concatenate %7, %7, %8, %7 in 1 : vector<1x32xf32>, vector<1x32xf32>, vector<1x32xf32>, vector<1x32xf32> -> vector<1x128xf32>
    %cst_9 = arith.constant 0.000000e+00 : f32
    %10 = vector.broadcast %cst_9 : f32 to vector<4x32xf32>
    %cst_10 = arith.constant 0.000000e+00 : f32
    %11 = vector.broadcast %cst_10 : f32 to vector<4x32xf32>
    %12 = vector.extract_strided_slice %5 {offsets = [0, 0], sizes = [4, 128], strides = [1, 1]} : vector<32x128xf32> to vector<4x128xf32>
    %13 = arith.truncf %10 : vector<4x32xf32> to vector<4x32xbf16>
    %cst_11 = arith.constant dense<0.000000e+00> : vector<4x128xf32>
    %14 = tpu.matmul %13, %6, %cst_11 {dimension_numbers = #tpu.dot_dimension_numbers<[1], [0], [0], [1], [0, 0, 1, 1], [], []>} : vector<4x32xbf16>, vector<32x128xbf16>, vector<4x128xf32> -> vector<4x128xf32>
    %15 = arith.addf %12, %14 : vector<4x128xf32>
    %16 = vector.broadcast %9 : vector<1x128xf32> to vector<4x128xf32>
    %17 = arith.mulf %15, %16 : vector<4x128xf32>
    %18 = math.tanh %17 : vector<4x128xf32>
    %cst_12 = arith.constant 5.000000e-01 : f32
    %19 = vector.broadcast %cst_12 : f32 to vector<4x128xf32>
    %20 = arith.mulf %19, %18 : vector<4x128xf32>
    %cst_13 = arith.constant 5.000000e-01 : f32
    %21 = vector.broadcast %cst_13 : f32 to vector<4x128xf32>
    %22 = arith.addf %20, %21 : vector<4x128xf32>
    %23 = vector.extract_strided_slice %22 {offsets = [0, 0], sizes = [4, 32], strides = [1, 1]} : vector<4x128xf32> to vector<4x32xf32>
    %24 = vector.extract_strided_slice %22 {offsets = [0, 32], sizes = [4, 32], strides = [1, 1]} : vector<4x128xf32> to vector<4x32xf32>
    %25 = vector.extract_strided_slice %18 {offsets = [0, 64], sizes = [4, 32], strides = [1, 1]} : vector<4x128xf32> to vector<4x32xf32>
    %26 = vector.extract_strided_slice %22 {offsets = [0, 96], sizes = [4, 32], strides = [1, 1]} : vector<4x128xf32> to vector<4x32xf32>
    %27 = arith.mulf %24, %11 : vector<4x32xf32>
    %28 = arith.mulf %23, %25 : vector<4x32xf32>
    %29 = arith.addf %27, %28 : vector<4x32xf32>
    %30 = math.tanh %29 : vector<4x32xf32>
    %31 = arith.mulf %26, %30 : vector<4x32xf32>
    %32 = vector.extract_strided_slice %5 {offsets = [4, 0], sizes = [4, 128], strides = [1, 1]} : vector<32x128xf32> to vector<4x128xf32>
    %33 = arith.truncf %31 : vector<4x32xf32> to vector<4x32xbf16>
    %cst_14 = arith.constant dense<0.000000e+00> : vector<4x128xf32>
    %34 = tpu.matmul %33, %6, %cst_14 {dimension_numbers = #tpu.dot_dimension_numbers<[1], [0], [0], [1], [0, 0, 1, 1], [], []>} : vector<4x32xbf16>, vector<32x128xbf16>, vector<4x128xf32> -> vector<4x128xf32>
    %35 = arith.addf %32, %34 : vector<4x128xf32>
    %36 = vector.broadcast %9 : vector<1x128xf32> to vector<4x128xf32>
    %37 = arith.mulf %35, %36 : vector<4x128xf32>
    %38 = math.tanh %37 : vector<4x128xf32>
    %cst_15 = arith.constant 5.000000e-01 : f32
    %39 = vector.broadcast %cst_15 : f32 to vector<4x128xf32>
    %40 = arith.mulf %39, %38 : vector<4x128xf32>
    %cst_16 = arith.constant 5.000000e-01 : f32
    %41 = vector.broadcast %cst_16 : f32 to vector<4x128xf32>
    %42 = arith.addf %40, %41 : vector<4x128xf32>
    %43 = vector.extract_strided_slice %42 {offsets = [0, 0], sizes = [4, 32], strides = [1, 1]} : vector<4x128xf32> to vector<4x32xf32>
    %44 = vector.extract_strided_slice %42 {offsets = [0, 32], sizes = [4, 32], strides = [1, 1]} : vector<4x128xf32> to vector<4x32xf32>
    %45 = vector.extract_strided_slice %38 {offsets = [0, 64], sizes = [4, 32], strides = [1, 1]} : vector<4x128xf32> to vector<4x32xf32>
    %46 = vector.extract_strided_slice %42 {offsets = [0, 96], sizes = [4, 32], strides = [1, 1]} : vector<4x128xf32> to vector<4x32xf32>
    %47 = arith.mulf %44, %29 : vector<4x32xf32>
    %48 = arith.mulf %43, %45 : vector<4x32xf32>
    %49 = arith.addf %47, %48 : vector<4x32xf32>
    %50 = math.tanh %49 : vector<4x32xf32>
    %51 = arith.mulf %46, %50 : vector<4x32xf32>
    %52 = vector.extract_strided_slice %5 {offsets = [8, 0], sizes = [4, 128], strides = [1, 1]} : vector<32x128xf32> to vector<4x128xf32>
    %53 = arith.truncf %51 : vector<4x32xf32> to vector<4x32xbf16>
    %cst_17 = arith.constant dense<0.000000e+00> : vector<4x128xf32>
    %54 = tpu.matmul %53, %6, %cst_17 {dimension_numbers = #tpu.dot_dimension_numbers<[1], [0], [0], [1], [0, 0, 1, 1], [], []>} : vector<4x32xbf16>, vector<32x128xbf16>, vector<4x128xf32> -> vector<4x128xf32>
    %55 = arith.addf %52, %54 : vector<4x128xf32>
    %56 = vector.broadcast %9 : vector<1x128xf32> to vector<4x128xf32>
    %57 = arith.mulf %55, %56 : vector<4x128xf32>
    %58 = math.tanh %57 : vector<4x128xf32>
    %cst_18 = arith.constant 5.000000e-01 : f32
    %59 = vector.broadcast %cst_18 : f32 to vector<4x128xf32>
    %60 = arith.mulf %59, %58 : vector<4x128xf32>
    %cst_19 = arith.constant 5.000000e-01 : f32
    %61 = vector.broadcast %cst_19 : f32 to vector<4x128xf32>
    %62 = arith.addf %60, %61 : vector<4x128xf32>
    %63 = vector.extract_strided_slice %62 {offsets = [0, 0], sizes = [4, 32], strides = [1, 1]} : vector<4x128xf32> to vector<4x32xf32>
    %64 = vector.extract_strided_slice %62 {offsets = [0, 32], sizes = [4, 32], strides = [1, 1]} : vector<4x128xf32> to vector<4x32xf32>
    %65 = vector.extract_strided_slice %58 {offsets = [0, 64], sizes = [4, 32], strides = [1, 1]} : vector<4x128xf32> to vector<4x32xf32>
    %66 = vector.extract_strided_slice %62 {offsets = [0, 96], sizes = [4, 32], strides = [1, 1]} : vector<4x128xf32> to vector<4x32xf32>
    %67 = arith.mulf %64, %49 : vector<4x32xf32>
    %68 = arith.mulf %63, %65 : vector<4x32xf32>
    %69 = arith.addf %67, %68 : vector<4x32xf32>
    %70 = math.tanh %69 : vector<4x32xf32>
    %71 = arith.mulf %66, %70 : vector<4x32xf32>
    %72 = vector.extract_strided_slice %5 {offsets = [12, 0], sizes = [4, 128], strides = [1, 1]} : vector<32x128xf32> to vector<4x128xf32>
    %73 = arith.truncf %71 : vector<4x32xf32> to vector<4x32xbf16>
    %cst_20 = arith.constant dense<0.000000e+00> : vector<4x128xf32>
    %74 = tpu.matmul %73, %6, %cst_20 {dimension_numbers = #tpu.dot_dimension_numbers<[1], [0], [0], [1], [0, 0, 1, 1], [], []>} : vector<4x32xbf16>, vector<32x128xbf16>, vector<4x128xf32> -> vector<4x128xf32>
    %75 = arith.addf %72, %74 : vector<4x128xf32>
    %76 = vector.broadcast %9 : vector<1x128xf32> to vector<4x128xf32>
    %77 = arith.mulf %75, %76 : vector<4x128xf32>
    %78 = math.tanh %77 : vector<4x128xf32>
    %cst_21 = arith.constant 5.000000e-01 : f32
    %79 = vector.broadcast %cst_21 : f32 to vector<4x128xf32>
    %80 = arith.mulf %79, %78 : vector<4x128xf32>
    %cst_22 = arith.constant 5.000000e-01 : f32
    %81 = vector.broadcast %cst_22 : f32 to vector<4x128xf32>
    %82 = arith.addf %80, %81 : vector<4x128xf32>
    %83 = vector.extract_strided_slice %82 {offsets = [0, 0], sizes = [4, 32], strides = [1, 1]} : vector<4x128xf32> to vector<4x32xf32>
    %84 = vector.extract_strided_slice %82 {offsets = [0, 32], sizes = [4, 32], strides = [1, 1]} : vector<4x128xf32> to vector<4x32xf32>
    %85 = vector.extract_strided_slice %78 {offsets = [0, 64], sizes = [4, 32], strides = [1, 1]} : vector<4x128xf32> to vector<4x32xf32>
    %86 = vector.extract_strided_slice %82 {offsets = [0, 96], sizes = [4, 32], strides = [1, 1]} : vector<4x128xf32> to vector<4x32xf32>
    %87 = arith.mulf %84, %69 : vector<4x32xf32>
    %88 = arith.mulf %83, %85 : vector<4x32xf32>
    %89 = arith.addf %87, %88 : vector<4x32xf32>
    %90 = math.tanh %89 : vector<4x32xf32>
    %91 = arith.mulf %86, %90 : vector<4x32xf32>
    %92 = vector.extract_strided_slice %5 {offsets = [16, 0], sizes = [4, 128], strides = [1, 1]} : vector<32x128xf32> to vector<4x128xf32>
    %93 = arith.truncf %91 : vector<4x32xf32> to vector<4x32xbf16>
    %cst_23 = arith.constant dense<0.000000e+00> : vector<4x128xf32>
    %94 = tpu.matmul %93, %6, %cst_23 {dimension_numbers = #tpu.dot_dimension_numbers<[1], [0], [0], [1], [0, 0, 1, 1], [], []>} : vector<4x32xbf16>, vector<32x128xbf16>, vector<4x128xf32> -> vector<4x128xf32>
    %95 = arith.addf %92, %94 : vector<4x128xf32>
    %96 = vector.broadcast %9 : vector<1x128xf32> to vector<4x128xf32>
    %97 = arith.mulf %95, %96 : vector<4x128xf32>
    %98 = math.tanh %97 : vector<4x128xf32>
    %cst_24 = arith.constant 5.000000e-01 : f32
    %99 = vector.broadcast %cst_24 : f32 to vector<4x128xf32>
    %100 = arith.mulf %99, %98 : vector<4x128xf32>
    %cst_25 = arith.constant 5.000000e-01 : f32
    %101 = vector.broadcast %cst_25 : f32 to vector<4x128xf32>
    %102 = arith.addf %100, %101 : vector<4x128xf32>
    %103 = vector.extract_strided_slice %102 {offsets = [0, 0], sizes = [4, 32], strides = [1, 1]} : vector<4x128xf32> to vector<4x32xf32>
    %104 = vector.extract_strided_slice %102 {offsets = [0, 32], sizes = [4, 32], strides = [1, 1]} : vector<4x128xf32> to vector<4x32xf32>
    %105 = vector.extract_strided_slice %98 {offsets = [0, 64], sizes = [4, 32], strides = [1, 1]} : vector<4x128xf32> to vector<4x32xf32>
    %106 = vector.extract_strided_slice %102 {offsets = [0, 96], sizes = [4, 32], strides = [1, 1]} : vector<4x128xf32> to vector<4x32xf32>
    %107 = arith.mulf %104, %89 : vector<4x32xf32>
    %108 = arith.mulf %103, %105 : vector<4x32xf32>
    %109 = arith.addf %107, %108 : vector<4x32xf32>
    %110 = math.tanh %109 : vector<4x32xf32>
    %111 = arith.mulf %106, %110 : vector<4x32xf32>
    %112 = vector.extract_strided_slice %5 {offsets = [20, 0], sizes = [4, 128], strides = [1, 1]} : vector<32x128xf32> to vector<4x128xf32>
    %113 = arith.truncf %111 : vector<4x32xf32> to vector<4x32xbf16>
    %cst_26 = arith.constant dense<0.000000e+00> : vector<4x128xf32>
    %114 = tpu.matmul %113, %6, %cst_26 {dimension_numbers = #tpu.dot_dimension_numbers<[1], [0], [0], [1], [0, 0, 1, 1], [], []>} : vector<4x32xbf16>, vector<32x128xbf16>, vector<4x128xf32> -> vector<4x128xf32>
    %115 = arith.addf %112, %114 : vector<4x128xf32>
    %116 = vector.broadcast %9 : vector<1x128xf32> to vector<4x128xf32>
    %117 = arith.mulf %115, %116 : vector<4x128xf32>
    %118 = math.tanh %117 : vector<4x128xf32>
    %cst_27 = arith.constant 5.000000e-01 : f32
    %119 = vector.broadcast %cst_27 : f32 to vector<4x128xf32>
    %120 = arith.mulf %119, %118 : vector<4x128xf32>
    %cst_28 = arith.constant 5.000000e-01 : f32
    %121 = vector.broadcast %cst_28 : f32 to vector<4x128xf32>
    %122 = arith.addf %120, %121 : vector<4x128xf32>
    %123 = vector.extract_strided_slice %122 {offsets = [0, 0], sizes = [4, 32], strides = [1, 1]} : vector<4x128xf32> to vector<4x32xf32>
    %124 = vector.extract_strided_slice %122 {offsets = [0, 32], sizes = [4, 32], strides = [1, 1]} : vector<4x128xf32> to vector<4x32xf32>
    %125 = vector.extract_strided_slice %118 {offsets = [0, 64], sizes = [4, 32], strides = [1, 1]} : vector<4x128xf32> to vector<4x32xf32>
    %126 = vector.extract_strided_slice %122 {offsets = [0, 96], sizes = [4, 32], strides = [1, 1]} : vector<4x128xf32> to vector<4x32xf32>
    %127 = arith.mulf %124, %109 : vector<4x32xf32>
    %128 = arith.mulf %123, %125 : vector<4x32xf32>
    %129 = arith.addf %127, %128 : vector<4x32xf32>
    %130 = math.tanh %129 : vector<4x32xf32>
    %131 = arith.mulf %126, %130 : vector<4x32xf32>
    %132 = vector.extract_strided_slice %5 {offsets = [24, 0], sizes = [4, 128], strides = [1, 1]} : vector<32x128xf32> to vector<4x128xf32>
    %133 = arith.truncf %131 : vector<4x32xf32> to vector<4x32xbf16>
    %cst_29 = arith.constant dense<0.000000e+00> : vector<4x128xf32>
    %134 = tpu.matmul %133, %6, %cst_29 {dimension_numbers = #tpu.dot_dimension_numbers<[1], [0], [0], [1], [0, 0, 1, 1], [], []>} : vector<4x32xbf16>, vector<32x128xbf16>, vector<4x128xf32> -> vector<4x128xf32>
    %135 = arith.addf %132, %134 : vector<4x128xf32>
    %136 = vector.broadcast %9 : vector<1x128xf32> to vector<4x128xf32>
    %137 = arith.mulf %135, %136 : vector<4x128xf32>
    %138 = math.tanh %137 : vector<4x128xf32>
    %cst_30 = arith.constant 5.000000e-01 : f32
    %139 = vector.broadcast %cst_30 : f32 to vector<4x128xf32>
    %140 = arith.mulf %139, %138 : vector<4x128xf32>
    %cst_31 = arith.constant 5.000000e-01 : f32
    %141 = vector.broadcast %cst_31 : f32 to vector<4x128xf32>
    %142 = arith.addf %140, %141 : vector<4x128xf32>
    %143 = vector.extract_strided_slice %142 {offsets = [0, 0], sizes = [4, 32], strides = [1, 1]} : vector<4x128xf32> to vector<4x32xf32>
    %144 = vector.extract_strided_slice %142 {offsets = [0, 32], sizes = [4, 32], strides = [1, 1]} : vector<4x128xf32> to vector<4x32xf32>
    %145 = vector.extract_strided_slice %138 {offsets = [0, 64], sizes = [4, 32], strides = [1, 1]} : vector<4x128xf32> to vector<4x32xf32>
    %146 = vector.extract_strided_slice %142 {offsets = [0, 96], sizes = [4, 32], strides = [1, 1]} : vector<4x128xf32> to vector<4x32xf32>
    %147 = arith.mulf %144, %129 : vector<4x32xf32>
    %148 = arith.mulf %143, %145 : vector<4x32xf32>
    %149 = arith.addf %147, %148 : vector<4x32xf32>
    %150 = math.tanh %149 : vector<4x32xf32>
    %151 = arith.mulf %146, %150 : vector<4x32xf32>
    %152 = vector.extract_strided_slice %5 {offsets = [28, 0], sizes = [4, 128], strides = [1, 1]} : vector<32x128xf32> to vector<4x128xf32>
    %153 = arith.truncf %151 : vector<4x32xf32> to vector<4x32xbf16>
    %cst_32 = arith.constant dense<0.000000e+00> : vector<4x128xf32>
    %154 = tpu.matmul %153, %6, %cst_32 {dimension_numbers = #tpu.dot_dimension_numbers<[1], [0], [0], [1], [0, 0, 1, 1], [], []>} : vector<4x32xbf16>, vector<32x128xbf16>, vector<4x128xf32> -> vector<4x128xf32>
    %155 = arith.addf %152, %154 : vector<4x128xf32>
    %156 = vector.broadcast %9 : vector<1x128xf32> to vector<4x128xf32>
    %157 = arith.mulf %155, %156 : vector<4x128xf32>
    %158 = math.tanh %157 : vector<4x128xf32>
    %cst_33 = arith.constant 5.000000e-01 : f32
    %159 = vector.broadcast %cst_33 : f32 to vector<4x128xf32>
    %160 = arith.mulf %159, %158 : vector<4x128xf32>
    %cst_34 = arith.constant 5.000000e-01 : f32
    %161 = vector.broadcast %cst_34 : f32 to vector<4x128xf32>
    %162 = arith.addf %160, %161 : vector<4x128xf32>
    %163 = vector.extract_strided_slice %162 {offsets = [0, 0], sizes = [4, 32], strides = [1, 1]} : vector<4x128xf32> to vector<4x32xf32>
    %164 = vector.extract_strided_slice %162 {offsets = [0, 32], sizes = [4, 32], strides = [1, 1]} : vector<4x128xf32> to vector<4x32xf32>
    %165 = vector.extract_strided_slice %158 {offsets = [0, 64], sizes = [4, 32], strides = [1, 1]} : vector<4x128xf32> to vector<4x32xf32>
    %166 = vector.extract_strided_slice %162 {offsets = [0, 96], sizes = [4, 32], strides = [1, 1]} : vector<4x128xf32> to vector<4x32xf32>
    %167 = arith.mulf %164, %149 : vector<4x32xf32>
    %168 = arith.mulf %163, %165 : vector<4x32xf32>
    %169 = arith.addf %167, %168 : vector<4x32xf32>
    %170 = math.tanh %169 : vector<4x32xf32>
    %171 = arith.mulf %166, %170 : vector<4x32xf32>
    %c0_35 = arith.constant 0 : index
    %c0_36 = arith.constant 0 : index
    %172 = memref.load %arg0[%c0_35, %c0_36] : memref<1x1xf32, #tpu.memory_space<smem>>
    %cst_37 = arith.constant 0.000000e+00 : f32
    %173 = vector.broadcast %cst_37 : f32 to vector<4x32xf32>
    %174 = arith.maximumf %171, %173 : vector<4x32xf32>
    %cst_38 = arith.constant 0.000000e+00 : f32
    %175 = vector.broadcast %cst_38 : f32 to vector<4x32xf32>
    %176 = arith.minimumf %171, %175 : vector<4x32xf32>
    %177 = vector.broadcast %172 : f32 to vector<4x32xf32>
    %178 = arith.mulf %177, %176 : vector<4x32xf32>
    %179 = arith.addf %174, %178 : vector<4x32xf32>
    %cst_39 = arith.constant dense<0.000000e+00> : vector<32xf32>
    %180 = vector.multi_reduction <add>, %179, %cst_39 [0] : vector<4x32xf32> to vector<32xf32>
    %181 = vector.shape_cast %180 : vector<32xf32> to vector<1x32xf32>
    %cst_40 = arith.constant 4.000000e+00 : f32
    %182 = vector.broadcast %cst_40 : f32 to vector<1x32xf32>
    %183 = arith.divf %181, %182 : vector<1x32xf32>
    %184 = vector.broadcast %183 : vector<1x32xf32> to vector<4x32xf32>
    %185 = arith.subf %179, %184 : vector<4x32xf32>
    %186 = arith.mulf %185, %185 : vector<4x32xf32>
    %cst_41 = arith.constant dense<0.000000e+00> : vector<32xf32>
    %187 = vector.multi_reduction <add>, %186, %cst_41 [0] : vector<4x32xf32> to vector<32xf32>
    %188 = vector.shape_cast %187 : vector<32xf32> to vector<1x32xf32>
    %cst_42 = arith.constant 4.000000e+00 : f32
    %189 = vector.broadcast %cst_42 : f32 to vector<1x32xf32>
    %190 = arith.divf %188, %189 : vector<1x32xf32>
    %191 = vector.broadcast %183 : vector<1x32xf32> to vector<4x32xf32>
    %192 = arith.subf %179, %191 : vector<4x32xf32>
    %cst_43 = arith.constant 9.99999974E-6 : f32
    %193 = vector.broadcast %cst_43 : f32 to vector<1x32xf32>
    %194 = arith.addf %190, %193 : vector<1x32xf32>
    %195 = math.rsqrt %194 : vector<1x32xf32>
    %196 = vector.broadcast %195 : vector<1x32xf32> to vector<4x32xf32>
    %197 = arith.mulf %192, %196 : vector<4x32xf32>
    %c0_44 = arith.constant 0 : index
    %c0_45 = arith.constant 0 : index
    %198 = vector.load %arg5[%c0_44, %c0_45] : memref<2x32xf32, #tpu.memory_space<vmem>>, vector<1x32xf32>
    %199 = vector.broadcast %198 : vector<1x32xf32> to vector<4x32xf32>
    %200 = arith.mulf %197, %199 : vector<4x32xf32>
    %c1 = arith.constant 1 : index
    %c0_46 = arith.constant 0 : index
    %201 = vector.load %arg5[%c1, %c0_46] : memref<2x32xf32, #tpu.memory_space<vmem>>, vector<1x32xf32>
    %202 = vector.broadcast %201 : vector<1x32xf32> to vector<4x32xf32>
    %203 = arith.addf %200, %202 : vector<4x32xf32>
    %c0_47 = arith.constant 0 : index
    %c0_48 = arith.constant 0 : index
    %204 = vector.load %arg6[%c0_47, %c0_48] : memref<32x8xf32, #tpu.memory_space<vmem>>, vector<32x8xf32>
    %cst_49 = arith.constant dense<0.000000e+00> : vector<4x8xf32>
    %205 = tpu.matmul %203, %204, %cst_49 {dimension_numbers = #tpu.dot_dimension_numbers<[1], [0], [0], [1], [0, 0, 1, 1], [], []>} : vector<4x32xf32>, vector<32x8xf32>, vector<4x8xf32> -> vector<4x8xf32>
    %c0_50 = arith.constant 0 : index
    %c0_51 = arith.constant 0 : index
    %206 = vector.load %arg7[%c0_50, %c0_51] : memref<3x8xf32, #tpu.memory_space<vmem>>, vector<1x8xf32>
    %207 = vector.broadcast %206 : vector<1x8xf32> to vector<4x8xf32>
    %208 = arith.addf %205, %207 : vector<4x8xf32>
    %cst_52 = arith.constant dense<0.000000e+00> : vector<8xf32>
    %209 = vector.multi_reduction <add>, %208, %cst_52 [0] : vector<4x8xf32> to vector<8xf32>
    %210 = vector.shape_cast %209 : vector<8xf32> to vector<1x8xf32>
    %cst_53 = arith.constant 4.000000e+00 : f32
    %211 = vector.broadcast %cst_53 : f32 to vector<1x8xf32>
    %212 = arith.divf %210, %211 : vector<1x8xf32>
    %213 = vector.broadcast %212 : vector<1x8xf32> to vector<4x8xf32>
    %214 = arith.subf %208, %213 : vector<4x8xf32>
    %215 = arith.mulf %214, %214 : vector<4x8xf32>
    %cst_54 = arith.constant dense<0.000000e+00> : vector<8xf32>
    %216 = vector.multi_reduction <add>, %215, %cst_54 [0] : vector<4x8xf32> to vector<8xf32>
    %217 = vector.shape_cast %216 : vector<8xf32> to vector<1x8xf32>
    %cst_55 = arith.constant 4.000000e+00 : f32
    %218 = vector.broadcast %cst_55 : f32 to vector<1x8xf32>
    %219 = arith.divf %217, %218 : vector<1x8xf32>
    %220 = vector.broadcast %212 : vector<1x8xf32> to vector<4x8xf32>
    %221 = arith.subf %208, %220 : vector<4x8xf32>
    %cst_56 = arith.constant 9.99999974E-6 : f32
    %222 = vector.broadcast %cst_56 : f32 to vector<1x8xf32>
    %223 = arith.addf %219, %222 : vector<1x8xf32>
    %224 = math.rsqrt %223 : vector<1x8xf32>
    %225 = vector.broadcast %224 : vector<1x8xf32> to vector<4x8xf32>
    %226 = arith.mulf %221, %225 : vector<4x8xf32>
    %c1_57 = arith.constant 1 : index
    %c0_58 = arith.constant 0 : index
    %227 = vector.load %arg7[%c1_57, %c0_58] : memref<3x8xf32, #tpu.memory_space<vmem>>, vector<1x8xf32>
    %228 = vector.broadcast %227 : vector<1x8xf32> to vector<4x8xf32>
    %229 = arith.mulf %226, %228 : vector<4x8xf32>
    %c2 = arith.constant 2 : index
    %c0_59 = arith.constant 0 : index
    %230 = vector.load %arg7[%c2, %c0_59] : memref<3x8xf32, #tpu.memory_space<vmem>>, vector<1x8xf32>
    %231 = vector.broadcast %230 : vector<1x8xf32> to vector<4x8xf32>
    %232 = arith.addf %229, %231 : vector<4x8xf32>
    %233 = arith.negf %232 : vector<4x8xf32>
    %234 = math.exp %233 : vector<4x8xf32>
    %cst_60 = arith.constant 1.000000e+00 : f32
    %235 = vector.broadcast %cst_60 : f32 to vector<4x8xf32>
    %236 = arith.addf %235, %234 : vector<4x8xf32>
    %237 = arith.divf %235, %236 : vector<4x8xf32>
    %c0_61 = arith.constant 0 : index
    %c0_62 = arith.constant 0 : index
    %238 = vector.load %arg8[%c0_61, %c0_62] : memref<4x8xf32, #tpu.memory_space<vmem>>, vector<4x8xf32>
    tpu.vector_store %arg8[%c0_61, %c0_62], %237 {strides = array<i32>} : memref<4x8xf32, #tpu.memory_space<vmem>>, vector<4x8xf32>,
    return
  }
}

</mosaic_0001>

<bundles_post_ra>
// kernel: tpu_custom_call.1
= control target key start
LH: loop header
LB: loop body
LE: loop exit
PB: predicated region body
PF: predicated region fallthrough
CT: control target
= control target key end

     0   :  { %vm45_vm0 = vcmask 130048   ;;  %v1160_v2 = vmov 0.0   ;;  %s1403_s0 = inlined_call_operand.<no memory space> [shape: f32[1,1], index: 0, kind: input, shape index: {}]   ;;  %s1404_s1 = inlined_call_operand.vmem [shape: f32[32,16], index: 1, kind: input, shape index: {}]   ;;  %s1405_s2 = inlined_call_operand.vmem [shape: f32[16,128], index: 2, kind: input, shape index: {}]   ;;  %s1406_s3 = inlined_call_operand.vmem [shape: bf16[32,128], index: 3, kind: input, shape index: {}]   ;;  %s1407_s4 = inlined_call_operand.vmem [shape: f32[1,128], index: 4, kind: input, shape index: {}]   ;;  %s1408_s5 = inlined_call_operand.vmem [shape: f32[2,32], index: 5, kind: input, shape index: {}]   ;;  %s1409_s6 = inlined_call_operand.vmem [shape: f32[32,8], index: 6, kind: input, shape index: {}]   ;;  %s1410_s7 = inlined_call_operand.vmem [shape: f32[3,8], index: 7, kind: input, shape index: {}]   ;;  %s1411_s8 = inlined_call_operand.hbm [shape: f32[4,8], index: 8, kind: output, shape index: {}]  }
   0x1   :  { %v37_v0 = vld [vmem:[%s1405_s2 + $0x8] sm:$0xff]  ;;  %v36_v1 = vld [vmem:[%s1405_s2] sm:$0xff]  ;;  %1013 = vmatprep.subr.bf16.mxu1 %v1160_v2 }
   0x2   :  { %1003 = vmatprep.subr.mxu0 %v37_v0  ;;  %v1223_v3 = vld [vmem:[%s1406_s3 + $0x8] sm:$0xff]   ;;  %v32_v4 = vld [vmem:[%s1404_s1] sm:$0xff] }
   0x3   :  { %1004 = vmatpush3.msra.mxu0 %v37_v0  ;;  %1007 = vmatprep.mubr.msk.f32.mxu0 %vm45_vm0, %v32_v4  ;;  %v33_v5 = vld [vmem:[%s1404_s1 + $0x8] sm:$0xff]  ;;  %v1236_v6 = vld [vmem:[%s1406_s3] sm:$0xff]  }
   0x4   :  { %1005 = vmatprep.subr.mxu0 %v36_v1  ;;  %1014 = vmatpush3.bf16.msra.mxu1 %v1223_v3 }
   0x5   :  { %14 = vsyncpa [#allocation4], 0  ;;  %1006 = vmatpush3.msra.mxu0 %v36_v1  ;;  %1015 = vmatprep.subr.bf16.mxu1 %v1160_v2  ;;  %vm1161_vm1 = vmmov 0   ;;  %v1162_v7 = vmov 0   ;;  %v208_v8 = vlaneseq  ;;  %vm147_vm2 = vcmask 523264   ;;  %s1164_s17 = smov 64  }
   0x6   :  { %1008 = vmatmul.mubr.msk.f32.vlgmr.msra.gmra.mxu0 %vm45_vm0, %v33_v5  ;;  %1017 = vmatprep.mubr.msk.bf16.mxu1 %vm1161_vm1, %v1160_v2  ;;  %v1163_v10 = vmov 1.0   ;;  %vm149_vm3 = vcmask 785408   ;;  %v1260_v15 = vld [vmem:[%s1407_s4] ss:$0 sm:$0xff]  ;;  %s1165_s4 = smov 32   ;;  %v34_v33 = vld [vmem:[%s1404_s1 + $0x10] sm:$0xff] }
   0x7   :  { %1021 = vmatprep.subr.bf16.mxu0 %v1160_v2  ;;  %v209_v9 = vshrl.u32 %v208_v8, 7  ;;  %v148_v11 = vsel %vm147_vm2, 0.5, %v1163_v10  ;;  %v35_v34 = vld [vmem:[%s1404_s1 + $0x18] sm:$0xff]  ;;  %1010 = vmatprep.mubr.msk.f32.mxu0 %vm45_vm0, %v34_v33  ;;  %vm163_vm4 = vcmask 261120   ;;  %s1166_s23 = smov 96   ;;  %vm761_vm5 = vcmask 1044224  }
   0x8   :  { %1016 = vmatpush3.bf16.msra.mxu1 %v1236_v6  ;;  %1022 = vmatpush3.bf16.msra.mxu0 %v1223_v3  ;;  %v150_v14 = vsel %vm149_vm3, %v148_v11, 0.5  ;;  %vm892_vm6 = vcmask 60416   ;;  %s1167_s3 = smov [#allocation3]  }
   0x9   :  { %1023 = vmatprep.subr.bf16.mxu0 %v1160_v2  ;;  %1029 = vmatprep.subr.bf16.mxu1 %v1160_v2  ;;  %v210_v13 = vsub.s32 0, %v209_v9  ;;  %s939_s16 = sshll.u32 %s1167_s3, 4  ;;  %s940_s16 = int_to_ptr.vmem [resolvable:$true] %s939_s16 }
   0xa   :  { %1011 = vmatmul.mubr.msk.f32.gmra.mxu0 %vm45_vm0, %v35_v34  ;;  %p1143_p1 = scmp.lt.s32.totalorder %s940_s16, %s940_s16 }
   0xb   :  { %1018 = vmatmul.mubr.bf16.vlgmr.msra.gmra.mxu1 %v1162_v7  ;;  %v1263_v18 = vrot.slane %v150_v14, %v210_v13  ;;  %1025 = vmatprep.mubr.msk.bf16.mxu0 %vm1161_vm1, %v1160_v2 }
   0xc   :  { %1024 = vmatpush3.bf16.msra.mxu0 %v1236_v6  ;;  %1030 = vmatpush3.bf16.msra.mxu1 %v1223_v3 }
   0xd   :  { %1031 = vmatprep.subr.bf16.mxu1 %v1160_v2  ;;  %1033 = vmatprep.mubr.msk.bf16.mxu1 %vm1161_vm1, %v1160_v2 }
   0xe   :  { %1037 = vmatprep.subr.bf16.mxu0 %v1160_v2 }
  0x10   :  { %1032 = vmatpush3.bf16.msra.mxu1 %v1236_v6 }
  0x11   :  { %1045 = vmatprep.subr.bf16.mxu1 %v1160_v2 }
  0xc6   :  { %v1255_v12 = vpop.f32.mrf.mxu0 }
  0xc7   :  { %v130_v0 = vadd.f32 %v1255_v12, %v1260_v15 }
  0xc8   :  { %v124_v16 = vpop.f32.mrf.mxu0 }
  0xc9   :  { %v125_v17 = vadd.f32 %v1260_v15, %v124_v16 }
  0xca   :  { %v1287_v40 = vpop.f32.mrf.mxu0 }
  0xcb   :  { %v201_v19 = vpop.f32.mrf.mxu1 }
  0xcc   :  { %v207_v20 = vadd.f32 %v201_v19, %v125_v17  ;;  %v1289_v41 = vpop.f32.mrf.mxu0 }
  0xcd   :  { %v1019_v21 = vpop.f32.mrf.mxu1 }
  0xce   :  { %v212_v22 = vmul.f32 %v1263_v18, %v207_v20 }
  0xcf   :  { %v204_v23 = vpop.f32.mrf.mxu1 }
  0xd0   :  { %1098 = vtanh.f32 %v212_v22 }
  0xd1   :  { %v1020_v24 = vpop.f32.mrf.mxu1 }
  0xdd   :  { %v1099_v25 = vpop.eup %1098 }
  0xde   :  { %218 = vrot.lane.b32.xlu0 %v1099_v25, %s1164_s17  ;;  %v214_v26 = vmul.f32 0.5, %v1099_v25 }
  0xe0   :  { %v215_v27 = vadd.f32 0.5, %v214_v26 }
  0xe2   :  { %v216_v30 = vmul.f32 0.0, %v215_v27 }
 0x150   :  { %v219_v28 = vpop.permute.xlu0 %218 }
 0x151   :  { %v221_v29 = vmul.f32 %v219_v28, %v215_v27 }
 0x153   :  { %223 = vrot.lane.b32.xlu0 %v221_v29, %s1165_s4 }
 0x1c5   :  { %v224_v31 = vpop.permute.xlu0 %223 }
 0x1c6   :  { %v226_v32 = vadd.f32 %v224_v31, %v216_v30 }
 0x1c8   :  { %1100 = vtanh.f32 %v226_v32  ;;  %v289_v54 = vrot.slane %v226_v32, 4 }
 0x1d5   :  { %v1101_v35 = vpop.eup %1100 }
 0x1d6   :  { %229 = vrot.lane.b32.xlu1 %v1101_v35, %s1164_s17 }
 0x248   :  { %v230_v36 = vpop.permute.xlu1 %229 }
 0x249   :  { %v232_v37 = vmul.f32 %v230_v36, %v215_v27 }
 0x24b   :  { %v233_v38 = vpack.c.bf16 %v232_v37, %v232_v37 }
 0x24d   :  { %235 = vrot.lane.b32.xlu1 %v233_v38, %s1165_s4 }
 0x2bf   :  { %v236_v39 = vpop.permute.xlu1 %235 }
 0x2c0   :  { %1026 = vmatmul.mubr.msk.bf16.vlgmr.msra.gmra.mxu0 %vm163_vm4, %v236_v39 }
 0x2c1   :  { %1038 = vmatpush3.bf16.msra.mxu0 %v1223_v3  ;;  %1041 = vmatprep.mubr.msk.bf16.mxu0 %vm1161_vm1, %v1160_v2 }
 0x2c2   :  { %1039 = vmatprep.subr.bf16.mxu0 %v1160_v2 }
 0x2c5   :  { %1040 = vmatpush3.bf16.msra.mxu0 %v1236_v6 }
 0x2c6   :  { %1053 = vmatprep.subr.bf16.mxu0 %v1160_v2 }
 0x380   :  { %v274_v42 = vpop.f32.mrf.mxu0 }
 0x381   :  { %v281_v43 = vrot.slane %v274_v42, 4 }
 0x382   :  { %v1027_v44 = vpop.f32.mrf.mxu0 }
 0x383   :  { %v283_v45 = vadd.f32 %v281_v43, %v125_v17 }
 0x384   :  { %v277_v46 = vpop.f32.mrf.mxu0 }
 0x385   :  { %v284_v47 = vmul.f32 %v283_v45, %v1263_v18 }
 0x386   :  { %v1028_v48 = vpop.f32.mrf.mxu0 }
 0x387   :  { %1102 = vtanh.f32 %v284_v47 }
 0x394   :  { %v1103_v49 = vpop.eup %1102 }
 0x395   :  { %293 = vrot.lane.b32.xlu0 %v1103_v49, %s1164_s17  ;;  %v286_v50 = vmul.f32 0.5, %v1103_v49 }
 0x397   :  { %v287_v51 = vadd.f32 0.5, %v286_v50  ;;  %v135_v50 = vadd.f32 %v1260_v15, %v1289_v41 }
 0x399   :  { %v291_v55 = vmul.f32 %v289_v54, %v287_v51 }
 0x407   :  { %v294_v52 = vpop.permute.xlu0 %293 }
 0x408   :  { %v296_v53 = vmul.f32 %v294_v52, %v287_v51 }
 0x40a   :  { %298 = vrot.lane.b32.xlu1 %v296_v53, %s1165_s4 }
 0x47c   :  { %v299_v56 = vpop.permute.xlu1 %298 }
 0x47d   :  { %v301_v57 = vadd.f32 %v299_v56, %v291_v55 }
 0x47f   :  { %1104 = vtanh.f32 %v301_v57  ;;  %v362_v17 = vrot.slane %v301_v57, 4 }
 0x48c   :  { %v1105_v58 = vpop.eup %1104 }
 0x48d   :  { %304 = vrot.lane.b32.xlu0 %v1105_v58, %s1164_s17 }
 0x4ff   :  { %v305_v59 = vpop.permute.xlu0 %304 }
 0x500   :  { %v307_v60 = vmul.f32 %v305_v59, %v287_v51 }
 0x502   :  { %v308_v61 = vpack.c.bf16 %v307_v60, %v307_v60 }
 0x504   :  { %v310_v62 = vrot.slane %v308_v61, 2 }
 0x506   :  { %311 = vrot.lane.b32.xlu1 %v310_v62, %s1165_s4 }
 0x578   :  { %v312_v63 = vpop.permute.xlu1 %311 }
 0x579   :  { %1034 = vmatmul.mubr.msk.bf16.vlgmr.msra.gmra.mxu1 %vm163_vm4, %v312_v63 }
 0x57a   :  { %1046 = vmatpush3.bf16.msra.mxu1 %v1223_v3  ;;  %1049 = vmatprep.mubr.msk.bf16.mxu1 %vm1161_vm1, %v1160_v2 }
 0x57b   :  { %1047 = vmatprep.subr.bf16.mxu1 %v1160_v2 }
 0x57e   :  { %1048 = vmatpush3.bf16.msra.mxu1 %v1236_v6 }
 0x57f   :  { %1061 = vmatprep.subr.bf16.mxu1 %v1160_v2 }
 0x639   :  { %v350_v1 = vpop.f32.mrf.mxu1 }
 0x63a   :  { %v356_v4 = vadd.f32 %v350_v1, %v130_v0 }
 0x63b   :  { %v1035_v5 = vpop.f32.mrf.mxu1 }
 0x63c   :  { %v357_v7 = vmul.f32 %v356_v4, %v1263_v18 }
 0x63d   :  { %v353_v8 = vpop.f32.mrf.mxu1 }
 0x63e   :  { %1106 = vtanh.f32 %v357_v7 }
 0x63f   :  { %v1036_v9 = vpop.f32.mrf.mxu1 }
 0x64b   :  { %v1107_v10 = vpop.eup %1106 }
 0x64c   :  { %366 = vrot.lane.b32.xlu0 %v1107_v10, %s1164_s17  ;;  %v359_v11 = vmul.f32 0.5, %v1107_v10 }
 0x64e   :  { %v360_v13 = vadd.f32 0.5, %v359_v11 }
 0x650   :  { %v364_v19 = vmul.f32 %v362_v17, %v360_v13 }
 0x6be   :  { %v367_v14 = vpop.permute.xlu0 %366 }
 0x6bf   :  { %v369_v16 = vmul.f32 %v367_v14, %v360_v13 }
 0x6c1   :  { %371 = vrot.lane.b32.xlu1 %v369_v16, %s1165_s4 }
 0x733   :  { %v372_v12 = vpop.permute.xlu1 %371 }
 0x734   :  { %v374_v20 = vadd.f32 %v372_v12, %v364_v19 }
 0x736   :  { %1108 = vtanh.f32 %v374_v20  ;;  %v437_v38 = vrot.slane %v374_v20, 4 }
 0x743   :  { %v1109_v21 = vpop.eup %1108 }
 0x744   :  { %377 = vrot.lane.b32.xlu0 %v1109_v21, %s1164_s17 }
 0x7b6   :  { %v378_v22 = vpop.permute.xlu0 %377 }
 0x7b7   :  { %v380_v23 = vmul.f32 %v378_v22, %v360_v13 }
 0x7b9   :  { %v381_v24 = vpack.c.bf16 %v380_v23, %v380_v23 }
 0x7bb   :  { %383 = vrot.lane.b32.xlu1 %v381_v24, %s1165_s4 }
 0x82d   :  { %v384_v25 = vpop.permute.xlu1 %383 }
 0x82e   :  { %1042 = vmatmul.mubr.msk.bf16.vlgmr.msra.gmra.mxu0 %vm163_vm4, %v384_v25 }
 0x82f   :  { %1054 = vmatpush3.bf16.msra.mxu0 %v1223_v3  ;;  %1057 = vmatprep.mubr.msk.bf16.mxu0 %vm1161_vm1, %v1160_v2 }
 0x830   :  { %1055 = vmatprep.subr.bf16.mxu0 %v1160_v2 }
 0x833   :  { %1056 = vmatpush3.bf16.msra.mxu0 %v1236_v6 }
 0x834   :  { %1069 = vmatprep.subr.bf16.mxu0 %v1160_v2 }
 0x8ee   :  { %v422_v26 = vpop.f32.mrf.mxu0 }
 0x8ef   :  { %v429_v27 = vrot.slane %v422_v26, 4 }
 0x8f0   :  { %v1043_v28 = vpop.f32.mrf.mxu0 }
 0x8f1   :  { %v431_v29 = vadd.f32 %v429_v27, %v130_v0 }
 0x8f2   :  { %v425_v30 = vpop.f32.mrf.mxu0 }
 0x8f3   :  { %v432_v31 = vmul.f32 %v431_v29, %v1263_v18 }
 0x8f4   :  { %v1044_v32 = vpop.f32.mrf.mxu0 }
 0x8f5   :  { %1110 = vtanh.f32 %v432_v31  ;;  %v140_v31 = vadd.f32 %v1287_v40, %v1260_v15 }
 0x902   :  { %v1111_v33 = vpop.eup %1110 }
 0x903   :  { %441 = vrot.lane.b32.xlu0 %v1111_v33, %s1164_s17  ;;  %v434_v34 = vmul.f32 0.5, %v1111_v33 }
 0x905   :  { %v435_v35 = vadd.f32 0.5, %v434_v34 }
 0x907   :  { %v439_v39 = vmul.f32 %v437_v38, %v435_v35 }
 0x975   :  { %v442_v36 = vpop.permute.xlu0 %441 }
 0x976   :  { %v444_v37 = vmul.f32 %v442_v36, %v435_v35 }
 0x978   :  { %446 = vrot.lane.b32.xlu1 %v444_v37, %s1165_s4 }
 0x9ea   :  { %v447_v42 = vpop.permute.xlu1 %446 }
 0x9eb   :  { %v449_v43 = vadd.f32 %v447_v42, %v439_v39 }
 0x9ed   :  { %1112 = vtanh.f32 %v449_v43  ;;  %v510_v62 = vrot.slane %v449_v43, 4 }
 0x9fa   :  { %v1113_v44 = vpop.eup %1112 }
 0x9fb   :  { %452 = vrot.lane.b32.xlu0 %v1113_v44, %s1164_s17 }
 0xa6d   :  { %v453_v45 = vpop.permute.xlu0 %452 }
 0xa6e   :  { %v455_v46 = vmul.f32 %v453_v45, %v435_v35 }
 0xa70   :  { %v456_v47 = vpack.c.bf16 %v455_v46, %v455_v46 }
 0xa72   :  { %v458_v48 = vrot.slane %v456_v47, 2 }
 0xa74   :  { %459 = vrot.lane.b32.xlu1 %v458_v48, %s1165_s4 }
 0xae6   :  { %v460_v49 = vpop.permute.xlu1 %459 }
 0xae7   :  { %1050 = vmatmul.mubr.msk.bf16.vlgmr.msra.gmra.mxu1 %vm163_vm4, %v460_v49 }
 0xae8   :  { %1062 = vmatpush3.bf16.msra.mxu1 %v1223_v3  ;;  %1065 = vmatprep.mubr.msk.bf16.mxu1 %vm1161_vm1, %v1160_v2 }
 0xae9   :  { %1063 = vmatprep.subr.bf16.mxu1 %v1160_v2 }
 0xaec   :  { %1064 = vmatpush3.bf16.msra.mxu1 %v1236_v6 }
 0xaed   :  { %1077 = vmatprep.subr.mxu1 %v1160_v2 }
 0xba7   :  { %v498_v51 = vpop.f32.mrf.mxu1 }
 0xba8   :  { %v504_v52 = vadd.f32 %v498_v51, %v135_v50 }
 0xba9   :  { %v1051_v53 = vpop.f32.mrf.mxu1 }
 0xbaa   :  { %v505_v54 = vmul.f32 %v504_v52, %v1263_v18 }
 0xbab   :  { %v501_v55 = vpop.f32.mrf.mxu1 }
 0xbac   :  { %1114 = vtanh.f32 %v505_v54 }
 0xbad   :  { %v1052_v56 = vpop.f32.mrf.mxu1 }
 0xbb9   :  { %v1115_v57 = vpop.eup %1114 }
 0xbba   :  { %514 = vrot.lane.b32.xlu0 %v1115_v57, %s1164_s17  ;;  %v507_v58 = vmul.f32 0.5, %v1115_v57 }
 0xbbc   :  { %v508_v59 = vadd.f32 0.5, %v507_v58 }
 0xbbe   :  { %v512_v63 = vmul.f32 %v510_v62, %v508_v59 }
 0xc2c   :  { %v515_v60 = vpop.permute.xlu0 %514 }
 0xc2d   :  { %v517_v61 = vmul.f32 %v515_v60, %v508_v59 }
 0xc2f   :  { %519 = vrot.lane.b32.xlu1 %v517_v61, %s1165_s4 }
 0xca1   :  { %v520_v41 = vpop.permute.xlu1 %519 }
 0xca2   :  { %v522_v0 = vadd.f32 %v520_v41, %v512_v63  ;;  %v961_v41 = vld [vmem:[%s1408_s5] ss:$0 sm:$0xff] }
 0xca4   :  { %1116 = vtanh.f32 %v522_v0  ;;  %v585_v22 = vrot.slane %v522_v0, 4 }
 0xcb1   :  { %v1117_v1 = vpop.eup %1116 }
 0xcb2   :  { %525 = vrot.lane.b32.xlu0 %v1117_v1, %s1164_s17 }
 0xd24   :  { %v526_v4 = vpop.permute.xlu0 %525 }
 0xd25   :  { %v528_v5 = vmul.f32 %v526_v4, %v508_v59 }
 0xd27   :  { %v529_v7 = vpack.c.bf16 %v528_v5, %v528_v5 }
 0xd29   :  { %531 = vrot.lane.b32.xlu1 %v529_v7, %s1165_s4  ;;  %v962_v7 = vld [vmem:[%s1408_s5 + $0x1] ss:$0 sm:$0xff] }
 0xd9b   :  { %v532_v8 = vpop.permute.xlu1 %531 }
 0xd9c   :  { %1058 = vmatmul.mubr.msk.bf16.vlgmr.msra.gmra.mxu0 %vm163_vm4, %v532_v8  ;;  %v810_v8 = vld [vmem:[%s1409_s6 + $0x18] sm:$0xff] }
 0xd9d   :  { %1070 = vmatpush3.bf16.msra.mxu0 %v1223_v3  ;;  %1073 = vmatprep.mubr.msk.bf16.mxu0 %vm1161_vm1, %v1160_v2 }
 0xd9e   :  { %1071 = vmatprep.subr.bf16.mxu0 %v1160_v2 }
 0xda1   :  { %1072 = vmatpush3.bf16.msra.mxu0 %v1236_v6 }
 0xe5c   :  { %v570_v9 = vpop.f32.mrf.mxu0 }
 0xe5d   :  { %v577_v10 = vrot.slane %v570_v9, 4  ;;  %v809_v9 = vld [vmem:[%s1409_s6 + $0x10] sm:$0xff] }
 0xe5e   :  { %v1059_v11 = vpop.f32.mrf.mxu0 }
 0xe5f   :  { %v579_v13 = vadd.f32 %v577_v10, %v135_v50  ;;  %v808_v10 = vld [vmem:[%s1409_s6 + $0x8] sm:$0xff]  ;;  %v807_v11 = vld [vmem:[%s1409_s6] sm:$0xff] }
 0xe60   :  { %v573_v14 = vpop.f32.mrf.mxu0 }
 0xe61   :  { %v580_v16 = vmul.f32 %v579_v13, %v1263_v18 }
 0xe62   :  { %v1060_v17 = vpop.f32.mrf.mxu0 }
 0xe63   :  { %1118 = vtanh.f32 %v580_v16  ;;  %v755_v16 = vstv %s1403_s0 }
 0xe70   :  { %v1119_v19 = vpop.eup %1118 }
 0xe71   :  { %589 = vrot.lane.b32.xlu0 %v1119_v19, %s1164_s17  ;;  %v582_v3 = vmul.f32 0.5, %v1119_v19 }
 0xe73   :  { %v583_v12 = vadd.f32 0.5, %v582_v3 }
 0xe75   :  { %v587_v6 = vmul.f32 %v585_v22, %v583_v12 }
 0xee3   :  { %v590_v20 = vpop.permute.xlu0 %589 }
 0xee4   :  { %v592_v21 = vmul.f32 %v590_v20, %v583_v12 }
 0xee6   :  { %594 = vrot.lane.b32.xlu1 %v592_v21, %s1165_s4 }
 0xf58   :  { %v595_v23 = vpop.permute.xlu1 %594 }
 0xf59   :  { %v597_v24 = vadd.f32 %v595_v23, %v587_v6 }
 0xf5b   :  { %1120 = vtanh.f32 %v597_v24  ;;  %v658_v45 = vrot.slane %v597_v24, 4 }
 0xf68   :  { %v1121_v25 = vpop.eup %1120 }
 0xf69   :  { %600 = vrot.lane.b32.xlu0 %v1121_v25, %s1164_s17 }
 0xfdb   :  { %v601_v26 = vpop.permute.xlu0 %600 }
 0xfdc   :  { %v603_v27 = vmul.f32 %v601_v26, %v583_v12 }
 0xfde   :  { %v604_v28 = vpack.c.bf16 %v603_v27, %v603_v27 }
 0xfe0   :  { %v606_v29 = vrot.slane %v604_v28, 2 }
 0xfe2   :  { %607 = vrot.lane.b32.xlu1 %v606_v29, %s1165_s4 }
0x1054   :  { %v608_v30 = vpop.permute.xlu1 %607 }
0x1055   :  { %1066 = vmatmul.mubr.msk.bf16.vlgmr.msra.gmra.mxu1 %vm163_vm4, %v608_v30 }
0x1056   :  { %1085 = vmatprep.mubr.msk.f32.mxu1 %vm1161_vm1, %v1160_v2  ;;  %1078 = vmatpush3.msra.mxu1 %v810_v8  ;;  %v965_v8 = vld [vmem:[%s1410_s7 + $0x1] ss:$0 sm:$0xff] }
0x1057   :  { %1079 = vmatprep.subr.mxu1 %v1160_v2 }
0x1058   :  { %1080 = vmatpush3.msra.mxu1 %v809_v9 }
0x1059   :  { %1081 = vmatprep.subr.mxu1 %v1160_v2 }
0x105a   :  { %1082 = vmatpush3.msra.mxu1 %v808_v10  ;;  %v966_v10 = vld [vmem:[%s1410_s7 + $0x2] ss:$0 sm:$0xff] }
0x105b   :  { %1083 = vmatprep.subr.mxu1 %v1160_v2 }
0x105c   :  { %1084 = vmatpush3.msra.mxu1 %v807_v11 }
0x1115   :  { %v646_v32 = vpop.f32.mrf.mxu1 }
0x1116   :  { %v652_v33 = vadd.f32 %v646_v32, %v140_v31 }
0x1117   :  { %v1067_v34 = vpop.f32.mrf.mxu1 }
0x1118   :  { %v653_v35 = vmul.f32 %v652_v33, %v1263_v18 }
0x1119   :  { %v649_v36 = vpop.f32.mrf.mxu1 }
0x111a   :  { %1122 = vtanh.f32 %v653_v35 }
0x111b   :  { %v1068_v37 = vpop.f32.mrf.mxu1 }
0x1127   :  { %v1123_v38 = vpop.eup %1122 }
0x1128   :  { %662 = vrot.lane.b32.xlu0 %v1123_v38, %s1164_s17  ;;  %v655_v39 = vmul.f32 0.5, %v1123_v38 }
0x112a   :  { %v656_v42 = vadd.f32 0.5, %v655_v39 }
0x112c   :  { %v660_v46 = vmul.f32 %v658_v45, %v656_v42 }
0x119a   :  { %v663_v43 = vpop.permute.xlu0 %662 }
0x119b   :  { %v665_v44 = vmul.f32 %v663_v43, %v656_v42 }
0x119d   :  { %667 = vrot.lane.b32.xlu1 %v665_v44, %s1165_s4 }
0x120f   :  { %v668_v15 = vpop.permute.xlu1 %667 }
0x1210   :  { %v670_v40 = vadd.f32 %v668_v15, %v660_v46 }
0x1212   :  { %1124 = vtanh.f32 %v670_v40  ;;  %v733_v0 = vrot.slane %v670_v40, 4 }
0x121f   :  { %v1125_v47 = vpop.eup %1124 }
0x1220   :  { %673 = vrot.lane.b32.xlu0 %v1125_v47, %s1164_s17  ;;  %v963_v47 = vld [vmem:[%s1410_s7] ss:$0 sm:$0xff] }
0x1292   :  { %v674_v48 = vpop.permute.xlu0 %673 }
0x1293   :  { %v676_v49 = vmul.f32 %v674_v48, %v656_v42 }
0x1295   :  { %v677_v50 = vpack.c.bf16 %v676_v49, %v676_v49 }
0x1297   :  { %679 = vrot.lane.b32.xlu1 %v677_v50, %s1165_s4 }
0x1309   :  { %v680_v51 = vpop.permute.xlu1 %679 }
0x130a   :  { %1074 = vmatmul.mubr.msk.bf16.vlgmr.msra.gmra.mxu0 %vm163_vm4, %v680_v51 }
0x13ca   :  { %v718_v52 = vpop.f32.mrf.mxu0 }
0x13cb   :  { %v725_v53 = vrot.slane %v718_v52, 4 }
0x13cc   :  { %v1075_v54 = vpop.f32.mrf.mxu0 }
0x13cd   :  { %v727_v55 = vadd.f32 %v725_v53, %v140_v31 }
0x13ce   :  { %v721_v56 = vpop.f32.mrf.mxu0 }
0x13cf   :  { %v728_v57 = vmul.f32 %v727_v55, %v1263_v18 }
0x13d0   :  { %v1076_v58 = vpop.f32.mrf.mxu0 }
0x13d1   :  { %1126 = vtanh.f32 %v728_v57 }
0x13de   :  { %v1127_v59 = vpop.eup %1126 }
0x13df   :  { %737 = vrot.lane.b32.xlu0 %v1127_v59, %s1164_s17  ;;  %v730_v60 = vmul.f32 0.5, %v1127_v59 }
0x13e1   :  { %v731_v61 = vadd.f32 0.5, %v730_v60 }
0x13e3   :  { %v735_v1 = vmul.f32 %v733_v0, %v731_v61 }
0x1451   :  { %v738_v62 = vpop.permute.xlu0 %737 }
0x1452   :  { %v740_v63 = vmul.f32 %v738_v62, %v731_v61 }
0x1454   :  { %742 = vrot.lane.b32.xlu1 %v740_v63, %s1165_s4 }
0x1458   :  { %793 = vrot.lane.b32.xlu1 %v961_v41, %s1166_s23 }
0x14c6   :  { %v743_v18 = vpop.permute.xlu1 %742 }
0x14c7   :  { %v745_v4 = vadd.f32 %v743_v18, %v735_v1 }
0x14c9   :  { %1128 = vtanh.f32 %v745_v4 }
0x14ca   :  { %v794_v42 = vpop.permute.xlu1 %793 }
0x14d6   :  { %v1129_v5 = vpop.eup %1128 }
0x14d7   :  { %748 = vrot.lane.b32.xlu0 %v1129_v5, %s1164_s17  ;;  %s1138_s17 = scalar_lea.vmem %s940_s16, 64 }
0x14d8   :  { %p1139_p0 = scmp.ne.s32.totalorder %s940_s16, %s1138_s17  ;;  %p1144_p2 = scmp.lt.s32.totalorder %s1138_s17, %s1138_s17 }
0x14da   :  { %p1145_p3 = por %p1144_p2, %p1143_p1 }
0x14db   :  { %803 = vrot.lane.b32.xlu0 %v962_v7, %s1166_s23 }
0x14dc   :  { %p1146_p4 = pnand %p1145_p3, %p1139_p0 }
0x1549   :  { %v749_v13 = vpop.permute.xlu0 %748 }
0x154a   :  { %v751_v14 = vmul.f32 %v749_v13, %v731_v61 }
0x154c   :  { %v754_v17 = vmin.f32 %v751_v14, 0.0  ;;  %v753_v19 = vmax.f32 %v751_v14, 0.0 }
0x154d   :  { %v804_v44 = vpop.permute.xlu0 %803 }
0x154e   :  { %v756_v3 = vmul.f32 %v755_v16, %v754_v17 }
0x1550   :  { %v757_v12 = vadd.f32 %v756_v3, %v753_v19 }
0x1552   :  { %v759_v20 = vrot.slane %v757_v12, 4 }
0x1554   :  { %v762_v21 = vsel %vm761_vm5, %v759_v20, 0.0 }
0x1555   :  { %v763_v22 = vrot.slane %v762_v21, 4 }
0x1557   :  { %v764_v6 = vadd.f32 %v763_v22, %v762_v21 }
0x1559   :  { %v765_v23 = vrot.slane %v764_v6, 2 }
0x155b   :  { %v766_v24 = vadd.f32 %v765_v23, %v764_v6 }
0x155d   :  { %v767_v25 = vrot.slane %v766_v24, 1 }
0x155f   :  { %v768_v2 = vadd.f32 %v767_v25, %v766_v24 }
0x1561   :  { %v770_v26 = vmul.f32 0.25, %v768_v2 }
0x1563   :  { %v771_v27 = vsub.f32 %v757_v12, %v770_v26 }
0x1565   :  { %v772_v28 = vmul.f32 %v771_v27, %v771_v27 }
0x1567   :  { %v774_v29 = vrot.slane %v772_v28, 4 }
0x1569   :  { %v776_v30 = vsel %vm761_vm5, %v774_v29, 0.0 }
0x156a   :  { %v777_v31 = vrot.slane %v776_v30, 4 }
0x156c   :  { %v778_v32 = vadd.f32 %v777_v31, %v776_v30 }
0x156e   :  { %v779_v33 = vrot.slane %v778_v32, 2 }
0x1570   :  { %v780_v34 = vadd.f32 %v779_v33, %v778_v32 }
0x1572   :  { %v781_v35 = vrot.slane %v780_v34, 1 }
0x1574   :  { %v782_v36 = vadd.f32 %v781_v35, %v780_v34 }
0x1576   :  { %v783_v37 = vmul.f32 0.25, %v782_v36 }
0x1578   :  { %v784_v38 = vadd.f32 1e-05, %v783_v37 }
0x157a   :  { %1130 = vrsqrt.f32 %v784_v38 }
0x1587   :  { %v1131_v39 = vpop.eup %1130 }
0x1588   :  { %v786_v43 = vmul.f32 %v1131_v39, %v771_v27 }
0x158a   :  { %v796_v45 = vmul.f32 %v794_v42, %v786_v43 }
0x158c   :  { %v806_v46 = vadd.f32 %v804_v44, %v796_v45 }
0x158e   :  { %v817_v15 = vrot.slane %v806_v46, 4 }
0x1590   :  { %818 = vrot.lane.b32.xlu1 %v817_v15, %s1165_s4 }
0x1602   :  { %v819_v40 = vpop.permute.xlu1 %818 }
0x1603   :  { %1086 = vmatmul.mubr.msk.f32.vlgmr.msra.gmra.mxu1 %vm163_vm4, %v819_v40 }
0x16c3   :  { %v888_v48 = vpop.f32.mrf.mxu1 }
0x16c4   :  { %v889_v49 = vadd.f32 %v963_v47, %v888_v48 }
0x16c5   :  { %v1087_v50 = vpop.f32.mrf.mxu1 }
0x16c6   :  { %v893_v51 = vsel %vm892_vm6, %v889_v49, 0.0 }
0x16c7   :  { %v894_v52 = vrot.slane %v893_v51, 4 }
0x16c9   :  { %v895_v53 = vadd.f32 %v894_v52, %v893_v51 }
0x16cb   :  { %v896_v54 = vrot.slane %v895_v53, 2 }
0x16cd   :  { %v897_v55 = vadd.f32 %v896_v54, %v895_v53 }
0x16cf   :  { %v898_v56 = vrot.slane %v897_v55, 1 }
0x16d1   :  { %v899_v57 = vadd.f32 %v898_v56, %v897_v55 }
0x16d3   :  { %v900_v58 = vmul.f32 0.25, %v899_v57 }
0x16d5   :  { %v901_v59 = vsub.f32 %v889_v49, %v900_v58 }
0x16d7   :  { %v902_v60 = vmul.f32 %v901_v59, %v901_v59 }
0x16d9   :  { %v903_v61 = vsel %vm892_vm6, %v902_v60, 0.0 }
0x16da   :  { %v904_v62 = vrot.slane %v903_v61, 4 }
0x16dc   :  { %v905_v63 = vadd.f32 %v904_v62, %v903_v61 }
0x16de   :  { %v906_v41 = vrot.slane %v905_v63, 2 }
0x16e0   :  { %v907_v0 = vadd.f32 %v906_v41, %v905_v63 }
0x16e2   :  { %v908_v1 = vrot.slane %v907_v0, 1 }
0x16e4   :  { %v909_v18 = vadd.f32 %v908_v1, %v907_v0 }
0x16e6   :  { %v910_v4 = vmul.f32 0.25, %v909_v18 }
0x16e8   :  { %v911_v5 = vadd.f32 1e-05, %v910_v4 }
0x16ea   :  { %1132 = vrsqrt.f32 %v911_v5 }
0x16f7   :  { %v1133_v7 = vpop.eup %1132 }
0x16f8   :  { %v913_v9 = vmul.f32 %v1133_v7, %v901_v59 }
0x16fa   :  { %v919_v11 = vmul.f32 %v965_v8, %v913_v9 }
0x16fc   :  { %v925_v13 = vadd.f32 %v966_v10, %v919_v11 }
0x16fe   :  { %v967_v14 = vmul.f32 -1.442695, %v925_v13 }
0x1700   :  { %1134 = vpow2.f32 %v967_v14 }
0x170d   :  { %v1135_v16 = vpop.eup %1134 }
0x170e   :  { %v929_v17 = vadd.f32 1.0, %v1135_v16 }
0x1710   :  { %1136 = vrcp.f32 %v929_v17 }
0x171d   :  { %v1137_v19 = vpop.eup %1136 }
0x171e   :  { %932 = vst.msk [vmem:[#allocation3] sm:$0xf] %vm892_vm6, %v1137_v19 }
0x171f   :  { %1149 = shalt.err (!%p1146_p4)
}
0x1720   :  { %942 = dma.vmem_to_hbm [thread:$0]  %s940_s16, 64, %s1411_s8, [#allocation4]  }
0x1721   :  { %1158 = dma.done.wait [#allocation4], 64  }
0x1722   :  { %1159 = vsyncadd [#allocation4], 4294967232 }
0x1723   :  { %946 = vsyncpa [#allocation4], 1 }

</bundles_post_ra>
